<compile_context>
chip_gen: v5e
topology: v5e:2x2
jax: 0.10.0
libtpu: 0.0.40
codegen_flags: <defaults>
</compile_context>

<pallas_src>
import math

import jax
import jax.numpy as jnp
from jax.experimental import pallas as pl
from jax.experimental.pallas import tpu as pltpu


def _full4net_kernel(x_ref, o_ref):
    # x_ref: (TB, TC) tile of the flattened (B, C*D*H*W) input.  Lane 0 of the
    # tile is x[b, 0, 0, 0, 0] for each row b of the current batch tile.
    col = x_ref[:, 0:1]                                   # (TB, 1)
    y = jnp.tanh(col)                                     # hid1
    y = jnp.tanh(y)                                       # hid2
    y = jnp.tanh(y)                                       # hid3
    o_ref[...] = jax.nn.sigmoid(y).astype(o_ref.dtype)    # out


def full4net_forward(x, *, tile_b=1024):
    """Full4Net forward. x: (B, C, D, H, W). Returns shape (B,), same dtype."""
    if x.ndim != 5:
        # TODO(synk): route ndim > 5 inputs (which keep trailing feature dims
        # after the four [:, 0] slices) through a tiled 2-D elementwise variant.
        raise NotImplementedError("Pallas Full4Net path implements the 5-D case.")
    B = x.shape[0]
    row = math.prod(x.shape[1:])            # flattened length of dims 1..4
    x2 = x.reshape(B, row)                  # free metadata reshape (row-major)

    # (8, 128)-legal tiles: each dim is either a multiple of (8, 128) or the
    # full array dim.
    tb = B if B <= tile_b else (tile_b - tile_b % 8)
    tc = row if row < 128 else 128          # only column-block 0 is ever read

    out2 = pl.pallas_call(
        _full4net_kernel,
        out_shape=jax.ShapeDtypeStruct((B, 1), x.dtype),
        grid=(pl.cdiv(B, tb),),
        in_specs=[pl.BlockSpec((tb, tc), lambda i: (i, 0))],
        out_specs=pl.BlockSpec((tb, 1), lambda i: (i, 0)),
        compiler_params=pltpu.CompilerParams(
            dimension_semantics=("parallel",)),
    )(x2)
    return out2.reshape(B)


def full4net_reference(x):
    """Pure-JAX mirror of the PyTorch forward (literal op order)."""
    out = jnp.tanh(x[:, 0])
    out = jnp.tanh(out[:, 0])
    out = jnp.tanh(out[:, 0])
    out = jax.nn.sigmoid(out[:, 0])
    return out


if __name__ == "__main__":
    key = jax.random.PRNGKey(0)
    # Small shapes consistent with the forward: four [:, 0] slices need >= 5-D.
    B, C, D, H, W = 2, 4, 3, 16, 16
    x = jax.random.normal(key, (B, C, D, H, W), dtype=jnp.float32)

    out = jax.block_until_ready(full4net_forward(x))
    ref = full4net_reference(x)

    assert out.shape == ref.shape == (B,), (out.shape, ref.shape)
    assert out.dtype == ref.dtype, (out.dtype, ref.dtype)
    assert jnp.allclose(out, ref, atol=1e-5, rtol=1e-5), "mismatch vs reference"

    print("KERNEL_OK")
</pallas_src>

<mosaic_0001>
module attributes {stable_mosaic.version = 11 : i64} {
  func.func @_full4net_kernel(%arg0: i32, %arg1: memref<2x128xf32, #tpu.memory_space<vmem>>, %arg2: memref<2x1xf32, #tpu.memory_space<vmem>>) attributes {dimension_semantics = [#tpu.dimension_semantics<parallel>], iteration_bounds = array<i64: 1>, scalar_prefetch = 0 : i64, scratch_operands = 0 : i64, tpu.core_type = #tpu.core_type<tc>, window_params = [{transform_indices = @transform_0, window_bounds = array<i64: 2, 128>}, {transform_indices = @transform_1, window_bounds = array<i64: 2, 1>}]} {
    %c0 = arith.constant 0 : index
    %c0_0 = arith.constant 0 : index
    %0 = vector.load %arg1[%c0, %c0_0] : memref<2x128xf32, #tpu.memory_space<vmem>>, vector<2x1xf32>
    %1 = math.tanh %0 : vector<2x1xf32>
    %2 = math.tanh %1 : vector<2x1xf32>
    %3 = math.tanh %2 : vector<2x1xf32>
    %4 = arith.negf %3 : vector<2x1xf32>
    %5 = math.exp %4 : vector<2x1xf32>
    %cst = arith.constant 1.000000e+00 : f32
    %6 = vector.broadcast %cst : f32 to vector<2x1xf32>
    %7 = arith.addf %6, %5 : vector<2x1xf32>
    %8 = arith.divf %6, %7 : vector<2x1xf32>
    %c0_1 = arith.constant 0 : index
    %c0_2 = arith.constant 0 : index
    %9 = vector.load %arg2[%c0_1, %c0_2] : memref<2x1xf32, #tpu.memory_space<vmem>>, vector<2x1xf32>
    tpu.vector_store %arg2[%c0_1, %c0_2], %8 {strides = array<i32>} : memref<2x1xf32, #tpu.memory_space<vmem>>, vector<2x1xf32>,
    return
  }
  func.func @transform_0(%arg0: i32) -> (i32, i32) {
    %c0_i32 = arith.constant 0 : i32
    %c0_i32_0 = arith.constant 0 : i32
    return %arg0, %c0_i32 : i32, i32
  }
  func.func @transform_1(%arg0: i32) -> (i32, i32) {
    %c0_i32 = arith.constant 0 : i32
    %c0_i32_0 = arith.constant 0 : i32
    return %arg0, %c0_i32 : i32, i32
  }
}

</mosaic_0001>

<bundles_post_ra>
// kernel: tpu_custom_call.1
= control target key start
LH: loop header
LB: loop body
LE: loop exit
PB: predicated region body
PF: predicated region fallthrough
CT: control target
= control target key end

     0   :  { %6 = vsyncpa [#allocation3], 0  ;;  %s90_s9 = smov [#allocation2]   ;;  %s107_s0 = inlined_call_operand.hbm [shape: f32[2,3072], index: 0, kind: input, shape index: {}]   ;;  %s108_s1 = inlined_call_operand.vmem [shape: f32[2,1], index: 1, kind: output, shape index: {}]  }
   0x1   :  { %s12_s8 = sshll.u32 %s107_s0, 4  ;;  %s14_s10 = sshll.u32 %s90_s9, 4  ;;  %s13_s8 = int_to_ptr.hbm [resolvable:$true] %s12_s8  ;;  %s15_s10 = int_to_ptr.vmem [resolvable:$true] %s14_s10 }
   0x2   :  { %17 = dma.hbm_to_vmem [thread:$0]  %s13_s8, 32, %s15_s10, [#allocation3]  }
   0x3   :  { %88 = dma.done.wait [#allocation3], 32  }
   0x4   :  { %89 = vsyncadd [#allocation3], 4294967264  ;;  %v22_v0 = vld [vmem:[#allocation2] sm:$0x3]  ;;  %vm45_vm4 = vcmask 1024  }
   0x5   :  { %54 = vtanh.f32 %v22_v0 }
   0xb   :  { %v55_v1 = vpop.eup %54 }
   0xc   :  { %56 = vtanh.f32 %v55_v1 }
  0x12   :  { %v57_v2 = vpop.eup %56 }
  0x13   :  { %58 = vtanh.f32 %v57_v2 }
  0x19   :  { %v59_v3 = vpop.eup %58 }
  0x1a   :  { %v52_v4 = vmul.f32 -1.442695, %v59_v3 }
  0x1c   :  { %60 = vpow2.f32 %v52_v4 }
  0x22   :  { %v61_v5 = vpop.eup %60 }
  0x23   :  { %v29_v6 = vadd.f32 1.0, %v61_v5 }
  0x25   :  { %62 = vrcp.f32 %v29_v6  ;;  %v41_v9 = vand.u32 2147483648, %v29_v6  ;;  %vm35_vm0 = vweird.f32 %v29_v6  ;;  %v39_v11 = vand.u32 2147483647, %v29_v6 }
  0x27   :  { %v42_v13 = vor.u32 1.1754944e-38, %v41_v9  ;;  %vm40_vm3 = vcmp.eq.f32.partialorder %v39_v11, 8.507059e+37 }
  0x2b   :  { %v63_v7 = vpop.eup %62 }
  0x2c   :  { %v31_v8 = vmul.f32 %v63_v7, %v29_v6  ;;  %vm36_vm1 = vweird.f32 %v63_v7 }
  0x2d   :  { %vm37_vm2 = vmor %vm35_vm0, %vm36_vm1 }
  0x2e   :  { %v32_v10 = vsub.f32 1.0, %v31_v8 }
  0x30   :  { %v33_v12 = vmul.f32 %v63_v7, %v32_v10 }
  0x32   :  { %v34_v14 = vadd.f32 %v63_v7, %v33_v12 }
  0x34   :  { %v38_v15 = vsel %vm37_vm2, %v63_v7, %v34_v14 }
  0x35   :  { %v43_v16 = vsel %vm40_vm3, %v42_v13, %v38_v15 }
  0x36   :  { %46 = vst.msk [vmem:[%s108_s1] sm:$0x3] %vm45_vm4, %v43_v16 }
  0x37   :  { %51 = vsyncpa [#allocation3], 1 }

</bundles_post_ra>
